<compile_context>
chip_gen: v6e
topology: v6e:2x2x1
jax: 0.10.0
libtpu: 0.0.40
codegen_flags: <defaults>
</compile_context>

<pallas_src>
import functools

import jax
import jax.numpy as jnp
from jax.experimental import pallas as pl
from jax.experimental.pallas import tpu as pltpu


def _round_up(x, m):
    return ((x + m - 1) // m) * m


# ---------------------------------------------------------------------------
# Kernel 1: conv-as-GEMM (bf16 operands, f32 accumulate) + bias, fused with
# per-tile BatchNorm partial statistics (per-channel sum and sum-of-squares).
# ---------------------------------------------------------------------------
def conv_gemm_stats_kernel(x_ref, w_ref, b_ref, y_ref, stats_ref, *,
                           m_valid, tm, need_mask):
    # Whole (small) contraction dim in one block -> single dot, no K loop.
    y = jnp.dot(x_ref[...], w_ref[...], preferred_element_type=jnp.float32)
    y = y + b_ref[...]
    y_ref[...] = y.astype(y_ref.dtype)

    if need_mask:  # static: only emitted when Mp != M
        row = pl.program_id(0) * tm + jax.lax.broadcasted_iota(
            jnp.int32, y.shape, 0)
        ys = jnp.where(row < m_valid, y, 0.0)
    else:
        ys = y

    psum = jnp.sum(ys, axis=0, keepdims=True)        # (1, TN)
    psq = jnp.sum(ys * ys, axis=0, keepdims=True)    # (1, TN)
    # Rows: 0 = partial sum, 1 = partial sum-of-squares, 2..7 = zero padding
    # (8-row block keeps the stats output (8,128)-layout friendly).
    pad = jnp.zeros((6, psum.shape[1]), jnp.float32)
    stats_ref[...] = jnp.concatenate([psum, psq, pad], axis=0)


# ---------------------------------------------------------------------------
# Kernel 2: y * scale + shift, then ReLU (scale/shift precomputed per channel)
# ---------------------------------------------------------------------------
def scale_shift_relu_kernel(y_ref, scale_ref, shift_ref, o_ref):
    o = y_ref[...] * scale_ref[...] + shift_ref[...]
    o_ref[...] = jnp.maximum(o, 0.0).astype(o_ref.dtype)


# ---------------------------------------------------------------------------
# Wrapper
# ---------------------------------------------------------------------------
def cbr_forward(x_nchw, weight, bias, gamma, beta, *, stride, padding, eps=1e-5):
    N, C, H, W = x_nchw.shape
    OC, _, KH, KW = weight.shape
    OH = (H + 2 * padding - KH) // stride + 1
    OW = (W + 2 * padding - KW) // stride + 1

    # --- im2col (plain-JAX glue) ---
    # TODO(synk): for large inputs, replace the materialized im2col with a
    # direct-conv GEMM that loops over (kh, kw) via shifted BlockSpec index
    # maps on the padded NHWC input, avoiding the KH*KW activation blow-up.
    x_nhwc = jnp.transpose(x_nchw, (0, 2, 3, 1))
    xp = jnp.pad(x_nhwc, ((0, 0), (padding, padding), (padding, padding), (0, 0)))
    patches = []
    for kh in range(KH):
        for kw in range(KW):
            patches.append(
                xp[:, kh:kh + stride * OH:stride, kw:kw + stride * OW:stride, :])
    Xc = jnp.concatenate(patches, axis=-1).reshape(N * OH * OW, KH * KW * C)
    Wc = jnp.transpose(weight, (2, 3, 1, 0)).reshape(KH * KW * C, OC)

    M, K = Xc.shape

    # --- tiling ---
    TM = 256                                       # GEMM rows per tile
    TN = 256 if (_round_up(OC, 128) % 256 == 0) else 128
    OCp = _round_up(OC, TN)
    Mp = _round_up(M, TM)
    n_mt = Mp // TM
    # Elementwise pass: biggest row block (<=2048) that divides Mp.
    TME = TM
    for cand in (2048, 1024, 512):
        if Mp % cand == 0:
            TME = cand
            break

    # --- operand prep: bf16 matmul inputs, f32 everywhere else; K unpadded ---
    Xp = jnp.zeros((Mp, K), jnp.bfloat16).at[:M, :].set(Xc.astype(jnp.bfloat16))
    Wp = jnp.zeros((K, OCp), jnp.bfloat16).at[:, :OC].set(Wc.astype(jnp.bfloat16))
    bp = jnp.zeros((1, OCp), jnp.float32).at[0, :OC].set(bias.astype(jnp.float32))
    gp = jnp.zeros((1, OCp), jnp.float32).at[0, :OC].set(gamma.astype(jnp.float32))
    bep = jnp.zeros((1, OCp), jnp.float32).at[0, :OC].set(beta.astype(jnp.float32))

    need_mask = (Mp != M)

    # --- conv GEMM + bias + fused partial BN statistics ---
    y, stats = pl.pallas_call(
        functools.partial(conv_gemm_stats_kernel,
                          m_valid=M, tm=TM, need_mask=need_mask),
        out_shape=(
            jax.ShapeDtypeStruct((Mp, OCp), jnp.float32),
            jax.ShapeDtypeStruct((n_mt * 8, OCp), jnp.float32),
        ),
        grid_spec=pltpu.PrefetchScalarGridSpec(
            num_scalar_prefetch=0,
            grid=(n_mt, OCp // TN),
            in_specs=[
                pl.BlockSpec((TM, K), lambda i, j: (i, 0)),
                pl.BlockSpec((K, TN), lambda i, j: (0, j)),
                pl.BlockSpec((1, TN), lambda i, j: (0, j)),
            ],
            out_specs=(
                pl.BlockSpec((TM, TN), lambda i, j: (i, j)),
                pl.BlockSpec((8, TN), lambda i, j: (i, j)),
            ),
        ),
        compiler_params=pltpu.CompilerParams(
            dimension_semantics=("parallel", "parallel")),
    )(Xp, Wp, bp)

    # --- finish BN stats + fold gamma/beta into per-channel scale/shift ------
    sp = stats.reshape(n_mt, 8, OCp)
    total = jnp.sum(sp[:, 0, :], axis=0)            # (OCp,)
    total_sq = jnp.sum(sp[:, 1, :], axis=0)         # (OCp,)
    inv_n = 1.0 / float(M)
    mean = total * inv_n
    var = total_sq * inv_n - mean * mean            # biased var (BN training)
    scale = (gp[0] * jax.lax.rsqrt(var + eps)).reshape(1, OCp)
    shift = (bep[0] - mean * scale[0]).reshape(1, OCp)

    # --- normalize + affine + ReLU (single elementwise pass over y) ----------
    out = pl.pallas_call(
        scale_shift_relu_kernel,
        out_shape=jax.ShapeDtypeStruct((Mp, OCp), jnp.float32),
        grid_spec=pltpu.PrefetchScalarGridSpec(
            num_scalar_prefetch=0,
            grid=(Mp // TME,),
            in_specs=[
                pl.BlockSpec((TME, OCp), lambda i: (i, 0)),
                pl.BlockSpec((1, OCp), lambda i: (0, 0)),
                pl.BlockSpec((1, OCp), lambda i: (0, 0)),
            ],
            out_specs=pl.BlockSpec((TME, OCp), lambda i: (i, 0)),
        ),
        compiler_params=pltpu.CompilerParams(
            dimension_semantics=("parallel",)),
    )(y, scale, shift)

    # --- back to NCHW ---
    out = out[:M, :OC].reshape(N, OH, OW, OC)
    return jnp.transpose(out, (0, 3, 1, 2))


def _reference_cbr(x, w, b, gamma, beta, *, stride, padding, eps=1e-5,
                   conv_dtype=jnp.float32):
    y = jax.lax.conv_general_dilated(
        x.astype(conv_dtype), w.astype(conv_dtype), (stride, stride),
        ((padding, padding), (padding, padding)),
        dimension_numbers=("NCHW", "OIHW", "NCHW"),
        preferred_element_type=jnp.float32,
    ) + b.reshape(1, -1, 1, 1)
    mean = y.mean(axis=(0, 2, 3), keepdims=True)
    var = y.var(axis=(0, 2, 3), keepdims=True)   # biased, like PyTorch BN train
    yn = (y - mean) * jax.lax.rsqrt(var + eps)
    return jnp.maximum(
        yn * gamma.reshape(1, -1, 1, 1) + beta.reshape(1, -1, 1, 1), 0.0)


if __name__ == "__main__":
    # CBR(in_channel=4, out_channel=8, ksize=3, padding=1, stride=1, bias=True)
    N, C, H, W = 2, 4, 16, 16
    OC, KH, KW = 8, 3, 3
    stride, padding = 1, 1

    key = jax.random.PRNGKey(0)
    k_x, k_w, k_b, k_g, k_be = jax.random.split(key, 5)
    x = jax.random.normal(k_x, (N, C, H, W), jnp.float32)
    weight = jax.random.normal(k_w, (OC, C, KH, KW), jnp.float32) * 0.1
    bias = jax.random.normal(k_b, (OC,), jnp.float32) * 0.1
    gamma = 1.0 + 0.1 * jax.random.normal(k_g, (OC,), jnp.float32)
    beta = 0.1 * jax.random.normal(k_be, (OC,), jnp.float32)

    out = cbr_forward(x, weight, bias, gamma, beta, stride=stride, padding=padding)
    out = jax.block_until_ready(out)

    # Tight check vs. a reference whose conv also uses bf16 operands (matches
    # the kernel's MXU numerics), plus a looser check vs. pure-f32 module math.
    ref_bf16 = _reference_cbr(x, weight, bias, gamma, beta,
                              stride=stride, padding=padding,
                              conv_dtype=jnp.bfloat16)
    ref_f32 = _reference_cbr(x, weight, bias, gamma, beta,
                             stride=stride, padding=padding,
                             conv_dtype=jnp.float32)
    assert out.shape == ref_f32.shape == (N, OC, H, W)
    err_tight = float(jnp.max(jnp.abs(out - ref_bf16)))
    err_loose = float(jnp.max(jnp.abs(out - ref_f32)))
    assert jnp.allclose(out, ref_bf16, rtol=5e-3, atol=5e-3), err_tight
    assert jnp.allclose(out, ref_f32, rtol=5e-2, atol=5e-2), err_loose

    print("KERNEL_OK")
</pallas_src>

<mosaic_0001>
module attributes {stable_mosaic.version = 11 : i64} {
  func.func @conv_gemm_stats_kernel(%arg0: i32, %arg1: i32, %arg2: memref<256x36xbf16, #tpu.memory_space<vmem>>, %arg3: memref<36x128xbf16, #tpu.memory_space<vmem>>, %arg4: memref<1x128xf32, #tpu.memory_space<vmem>>, %arg5: memref<256x128xf32, #tpu.memory_space<vmem>>, %arg6: memref<8x128xf32, #tpu.memory_space<vmem>>) attributes {dimension_semantics = [#tpu.dimension_semantics<parallel>, #tpu.dimension_semantics<parallel>], iteration_bounds = array<i64: 2, 1>, scalar_prefetch = 0 : i64, scratch_operands = 0 : i64, tpu.core_type = #tpu.core_type<tc>, window_params = [{transform_indices = @transform_0, window_bounds = array<i64: 256, 36>}, {transform_indices = @transform_1, window_bounds = array<i64: 36, 128>}, {transform_indices = @transform_2, window_bounds = array<i64: 1, 128>}, {transform_indices = @transform_3, window_bounds = array<i64: 256, 128>}, {transform_indices = @transform_4, window_bounds = array<i64: 8, 128>}]} {
    %c0 = arith.constant 0 : index
    %c0_0 = arith.constant 0 : index
    %0 = vector.load %arg2[%c0, %c0_0] : memref<256x36xbf16, #tpu.memory_space<vmem>>, vector<256x36xbf16>
    %c0_1 = arith.constant 0 : index
    %c0_2 = arith.constant 0 : index
    %1 = vector.load %arg3[%c0_1, %c0_2] : memref<36x128xbf16, #tpu.memory_space<vmem>>, vector<36x128xbf16>
    %cst = arith.constant dense<0.000000e+00> : vector<256x128xf32>
    %2 = tpu.matmul %0, %1, %cst {dimension_numbers = #tpu.dot_dimension_numbers<[1], [0], [0], [1], [0, 0, 1, 1], [], []>} : vector<256x36xbf16>, vector<36x128xbf16>, vector<256x128xf32> -> vector<256x128xf32>
    %c0_3 = arith.constant 0 : index
    %c0_4 = arith.constant 0 : index
    %3 = vector.load %arg4[%c0_3, %c0_4] : memref<1x128xf32, #tpu.memory_space<vmem>>, vector<1x128xf32>
    %4 = vector.broadcast %3 : vector<1x128xf32> to vector<256x128xf32>
    %5 = arith.addf %2, %4 : vector<256x128xf32>
    %c0_5 = arith.constant 0 : index
    %c0_6 = arith.constant 0 : index
    %6 = vector.load %arg5[%c0_5, %c0_6] : memref<256x128xf32, #tpu.memory_space<vmem>>, vector<256x128xf32>
    tpu.vector_store %arg5[%c0_5, %c0_6], %5 {strides = array<i32>} : memref<256x128xf32, #tpu.memory_space<vmem>>, vector<256x128xf32>,
    %cst_7 = arith.constant dense<0.000000e+00> : vector<128xf32>
    %7 = vector.multi_reduction <add>, %5, %cst_7 [0] : vector<256x128xf32> to vector<128xf32>
    %8 = vector.shape_cast %7 : vector<128xf32> to vector<1x128xf32>
    %9 = arith.mulf %5, %5 : vector<256x128xf32>
    %cst_8 = arith.constant dense<0.000000e+00> : vector<128xf32>
    %10 = vector.multi_reduction <add>, %9, %cst_8 [0] : vector<256x128xf32> to vector<128xf32>
    %11 = vector.shape_cast %10 : vector<128xf32> to vector<1x128xf32>
    %cst_9 = arith.constant 0.000000e+00 : f32
    %12 = vector.broadcast %cst_9 : f32 to vector<6x128xf32>
    %13 = tpu.concatenate %8, %11, %12 in 0 : vector<1x128xf32>, vector<1x128xf32>, vector<6x128xf32> -> vector<8x128xf32>
    %c0_10 = arith.constant 0 : index
    %c0_11 = arith.constant 0 : index
    %14 = vector.load %arg6[%c0_10, %c0_11] : memref<8x128xf32, #tpu.memory_space<vmem>>, vector<8x128xf32>
    tpu.vector_store %arg6[%c0_10, %c0_11], %13 {strides = array<i32>} : memref<8x128xf32, #tpu.memory_space<vmem>>, vector<8x128xf32>,
    return
  }
  func.func @transform_0(%arg0: i32, %arg1: i32) -> (i32, i32) {
    %c0_i32 = arith.constant 0 : i32
    %c0_i32_0 = arith.constant 0 : i32
    return %arg0, %c0_i32 : i32, i32
  }
  func.func @transform_1(%arg0: i32, %arg1: i32) -> (i32, i32) {
    %c0_i32 = arith.constant 0 : i32
    %c0_i32_0 = arith.constant 0 : i32
    return %c0_i32, %arg1 : i32, i32
  }
  func.func @transform_2(%arg0: i32, %arg1: i32) -> (i32, i32) {
    %c0_i32 = arith.constant 0 : i32
    %c0_i32_0 = arith.constant 0 : i32
    return %c0_i32, %arg1 : i32, i32
  }
  func.func @transform_3(%arg0: i32, %arg1: i32) -> (i32, i32) {
    %c0_i32 = arith.constant 0 : i32
    return %arg0, %arg1 : i32, i32
  }
  func.func @transform_4(%arg0: i32, %arg1: i32) -> (i32, i32) {
    %c0_i32 = arith.constant 0 : i32
    return %arg0, %arg1 : i32, i32
  }
}

</mosaic_0001>

<bundles_post_ra>
// kernel: tpu_custom_call.1
= control target key start
LH: loop header
LB: loop body
LE: loop exit
PB: predicated region body
PF: predicated region fallthrough
CT: control target
= control target key end

     0   :  { %10 = vsyncpa [#allocation3], 0  ;;  %s1612_s0 = inlined_call_operand.vmem [shape: bf16[512,36], index: 0, kind: input, shape index: {}]   ;;  %s1613_s1 = inlined_call_operand.vmem [shape: bf16[36,128], index: 1, kind: input, shape index: {}]   ;;  %s1614_s2 = inlined_call_operand.vmem [shape: f32[1,128], index: 2, kind: input, shape index: {}]   ;;  %s1615_s3 = inlined_call_operand.hbm [shape: f32[512,128], index: 3, kind: output, shape index: {0}]   ;;  %s1616_s4 = inlined_call_operand.hbm [shape: f32[16,128], index: 4, kind: output, shape index: {1}]  }
   0x1   :  { %12 = vsyncpa [#allocation3 + $0x1], 0 }
   0x2   :  { %13 = vsyncpa [#allocation5], 0 }
   0x3   :  { %15 = vsyncpa [#allocation5 + $0x1], 0  ;;  %s1257_s15 = smov 0   ;;  %s1259_s16 = smov 0  }
   0x4   :  { %s1261_s17 = smov 0   ;;  %s1263_s18 = smov 0  }
   0x5   :  { %s1265_s19 = smov 0   ;;  %s1267_s20 = smov 0  }
   0x6 LB: > { %s919_s21 = sadd.s32 4294967295, %s1226_s20   ;;  %s920_s22 = sadd.s32 4294967294, %s1226_s20   ;;  %s1226_s20 = sphi %s1267_s20, %s21_s20   ;;  %s1222_s19 = sphi %s1265_s19, %s1623_s19   ;;  %s1218_s18 = sphi %s1263_s18, %s1622_s18   ;;  %s1214_s17 = sphi %s1261_s17, %s1621_s17   ;;  %s1210_s16 = sphi %s1259_s16, %s1620_s16   ;;  %s1206_s15 = sphi %s1257_s15, %s1619_s15  }
   0x7   : > { %s33_s23 = sadd.s32 1, %s1222_s19  ;;  %s120_s24 = sadd.s32 1, %s1214_s17 }
   0x8   : > { %p35_p0 = scmp.ge.s32.totalorder %s33_s23, 2  ;;  %p130_p1 = scmp.ne.s32.totalorder %s1214_s17, %s1210_s16 }
   0x9   : > { %p131_p2 = scmp.eq.s32.totalorder %s919_s21, 1  ;;  %p136_p3 = scmp.ne.s32.totalorder %s1210_s16, %s1206_s15 }
   0xa   : > { %s1625_s23 = smov (%p35_p0, %s33_s23), 0  ;;  %p137_p5 = scmp.eq.s32.totalorder %s920_s22, 1 }
   0xb   : > { %p1297_p4 = por %p131_p2, %p130_p1  ;;  %s115_s26 = ssub.s32 %s1222_s19, %s1625_s23 }
   0xc   : > { %p925_p6 = scmp.ge.s32.totalorder %s1226_s20, 1  ;;  %p118_p7 = scmp.eq.s32.totalorder %s115_s26, 0 }
   0xd   : > { %p1304_p8 = por %p137_p5, %p136_p3  ;;  %p205_p9 = scmp.lt.s32.totalorder %s1226_s20, 3 }
   0xe   : > { %s1310_s28 = scalar_select %p118_p7, %s1214_s17, %s120_s24  }
   0xf   : > { %p206_p10 = pnand %p925_p6, %p205_p9 }
  0x10   : > { %s928_s7 = sshll.u32 (!%p206_p10), %s1218_s18, 5  ;;  %s1363_s14 = sand.u32 (!%p206_p10), 1, %s1210_s16  }
  0x11   : > { %209 = sbr.rel (%p206_p10) target bundleno = 337 (0x151), region = 32  ;;  %p244_p11 = scmp.lt.s32.totalorder (!%p206_p10), %s928_s7, 63 }
  0x12   : > { %s926_s21 = sshll.u32 (!%p206_p10), %s1363_s14, 8  ;;  %s973_s29 = sshll.u32 (!%p206_p10), %s1218_s18, 12 }
  0x13   : > { %s1372_s26 = scalar_lea.vmem (!%p206_p10), [#allocation2], %s926_s21  ;;  %s754_s8 = scalar_lea.sflag (!%p206_p10), [#allocation3], %s1363_s14 }
  0x14   : > { %s773_s30 = sshll.u32 (!%p206_p10), %s1372_s26, 4  ;;  %s1485_s30 = int_to_ptr.vmem [resolvable:$true] %s773_s30 }
  0x15   : > { %s1120_s9 = scalar_lea.vmem (!%p206_p10), %s1485_s30, 4096 }
  0x16   : > { %v1101_v0 = vld [vmem:[%s1613_s1 + $0x10] ss:$0 sps:$4 sm:$0x33]   ;;  %vm446_vm0 = vcmask 1041408   ;;  %v1102_v1 = vld [vmem:[%s1613_s1 + $0x8] sm:$0xff]   ;;  %v1103_v3 = vld [vmem:[%s1613_s1] sm:$0xff]   ;;  %p1121_p12 = scmp.ne.s32.totalorder %s1485_s30, %s1120_s9 }
  0x17   : > { %1037 = vmatprep.subr.msk.bf16.mxu0 %vm446_vm0, %v1101_v0  ;;  %v448_v2 = vsel %vm446_vm0, %v1101_v0, 0  ;;  %1038 = vmatprep.subr.msk.bf16.mxu1 %vm446_vm0, %v1101_v0  ;;  %s1627_s7 = smov (!%p244_p11, %s928_s7), 63  ;;  %vm397_vm1 = vcmask 293888   ;;  %v1369_v20 = vld [vmem:[%s1614_s2] ss:$0 sm:$0xff] }
  0x18   : > { %994 = vmatpush3.bf16.msra.mxu0 %v448_v2  ;;  %1034 = vmatpush3.bf16.msra.mxu1 %v448_v2  ;;  %s929_s10 = sshll.u32 %s1627_s7, 2  ;;  %s1483_s7 = scalar_lea.hbm %s1615_s3, %s973_s29 }
  0x19   : > { %995 = vmatprep.subr.bf16.mxu0 %v1102_v1  ;;  %1032 = vmatprep.subr.bf16.mxu1 %v1102_v1  ;;  %s1328_s13 = scalar_lea.vmem %s1612_s0, %s929_s10  ;;  %p1122_p13 = pnand %p1121_p12, %p1297_p4 }
  0x1a   : > { %v1104_v4 = vld [vmem:[%s1328_s13] sm:$0xff]   ;;  %v1105_v5 = vld [vmem:[%s1328_s13 + $0x8] sm:$0xff]   ;;  %v1106_v6 = vld [vmem:[%s1328_s13 + $0x10] sm:$0xff]   ;;  %s1228_s10 = smov [#allocation2]  }
  0x1b   : > { %999 = vmatprep.mubr.msk.bf16.mxu0 %vm397_vm1, %v1104_v4  ;;  %v1107_v7 = vld [vmem:[%s1328_s13 + $0x18] sm:$0xff]   ;;  %v1108_v8 = vld [vmem:[%s1328_s13 + $0x20] sm:$0xff]   ;;  %v1113_v10 = vld [vmem:[%s1328_s13 + $0x48] sm:$0xff]   ;;  %p1123_p0 = pneg %p1122_p13  ;;  %s1124_s11 = sshll.u32 %s1228_s10, 4  ;;  %s1125_s11 = int_to_ptr.vmem [resolvable:$false] %s1124_s11 }
  0x1c   : > { %996 = vmatpush3.bf16.msra.mxu0 %v1102_v1  ;;  %1035 = vmatpush3.bf16.msra.mxu1 %v1102_v1  ;;  %v1112_v9 = vld [vmem:[%s1328_s13 + $0x40] sm:$0xff]   ;;  %v1114_v11 = vld [vmem:[%s1328_s13 + $0x50] sm:$0xff]   ;;  %v1115_v12 = vld [vmem:[%s1328_s13 + $0x58] sm:$0xff]   ;;  %s1126_s12 = scalar_lea.vmem %s1125_s11, 8192  ;;  %p1127_p1 = scmp.lt.s32.totalorder %s1485_s30, %s1125_s11 }
  0x1d   : > { %997 = vmatprep.subr.bf16.mxu0 %v1103_v3  ;;  %1033 = vmatprep.subr.bf16.mxu1 %v1103_v3  ;;  %v1116_v13 = vld [vmem:[%s1328_s13 + $0x60] sm:$0xff]   ;;  %v1109_v14 = vld [vmem:[%s1328_s13 + $0x28] sm:$0xff]   ;;  %v1110_v15 = vld [vmem:[%s1328_s13 + $0x30] sm:$0xff]   ;;  %p1128_p2 = scmp.lt.s32.totalorder %s1126_s12, %s1120_s9 }
  0x1e   : > { %1015 = vmatprep.mubr.msk.bf16.mxu1 %vm397_vm1, %v1112_v9  ;;  %v1117_v16 = vld [vmem:[%s1328_s13 + $0x68] sm:$0xff]   ;;  %v1118_v17 = vld [vmem:[%s1328_s13 + $0x70] sm:$0xff]   ;;  %v1111_v18 = vld [vmem:[%s1328_s13 + $0x38] sm:$0xff]  }
  0x1f   : > { %v1119_v19 = vld [vmem:[%s1328_s13 + $0x78] sm:$0xff]   ;;  %p1129_p3 = por %p1128_p2, %p1127_p1 }
  0x20   : > { %998 = vmatpush3.bf16.msra.mxu0 %v1103_v3  ;;  %1036 = vmatpush3.bf16.msra.mxu1 %v1103_v3 }
  0x21   : > { %p1130_p5 = pnand %p1129_p3, %p1123_p0 }
  0x23   : > { %1000 = vmatmul.mubr.msk.bf16.vlgmr.msra.gmra.mxu0 %vm397_vm1, %v1105_v5  ;;  %1016 = vmatmul.mubr.msk.bf16.vlgmr.msra.gmra.mxu1 %vm397_vm1, %v1113_v10 }
  0x24   : > { %1003 = vmatprep.mubr.msk.bf16.mxu0 %vm397_vm1, %v1106_v6  ;;  %1019 = vmatprep.mubr.msk.bf16.mxu1 %vm397_vm1, %v1114_v11 }
  0x2b   : > { %1004 = vmatmul.mubr.msk.bf16.gmra.mxu0 %vm397_vm1, %v1107_v7  ;;  %1020 = vmatmul.mubr.msk.bf16.gmra.mxu1 %vm397_vm1, %v1115_v12 }
  0x2c   : > { %1007 = vmatprep.mubr.msk.bf16.mxu0 %vm397_vm1, %v1108_v8  ;;  %1023 = vmatprep.mubr.msk.bf16.mxu1 %vm397_vm1, %v1116_v13 }
  0x33   : > { %1008 = vmatmul.mubr.msk.bf16.gmra.mxu0 %vm397_vm1, %v1109_v14  ;;  %1024 = vmatmul.mubr.msk.bf16.gmra.mxu1 %vm397_vm1, %v1117_v16 }
  0x34   : > { %1011 = vmatprep.mubr.msk.bf16.mxu0 %vm397_vm1, %v1110_v15  ;;  %1027 = vmatprep.mubr.msk.bf16.mxu1 %vm397_vm1, %v1118_v17 }
  0x3b   : > { %1012 = vmatmul.mubr.msk.bf16.gmra.mxu0 %vm397_vm1, %v1111_v18  ;;  %1028 = vmatmul.mubr.msk.bf16.gmra.mxu1 %vm397_vm1, %v1119_v19 }
  0xe3   : > { %v1001_v21 = vpop.f32.mrf.mxu0  ;;  %v1017_v28 = vpop.f32.mrf.mxu1 }
  0xe4   : > { %v493_v22 = vadd.f32 %v1001_v21, %v1369_v20  ;;  %v1381_v30 = vadd.f32 %v1017_v28, %v1369_v20 }
  0xe5   : > { %v484_v23 = vpop.f32.mrf.mxu0  ;;  %v548_v32 = vpop.f32.mrf.mxu1 }
  0xe6   : > { %613 = vst [vmem:[%s1372_s26 + $0x10] sm:$0xff] %v493_v22  ;;  %v485_v24 = vadd.f32 %v1369_v20, %v484_v23  ;;  %629 = vst [vmem:[%s1372_s26 + $0x90] sm:$0xff] %v1381_v30  ;;  %v1388_v38 = vadd.f32 %v1369_v20, %v548_v32  ;;  %v682_v40 = vmul.f32 %v493_v22, %v493_v22 }
  0xe7   : > { %v1002_v25 = vpop.f32.mrf.mxu0  ;;  %v1018_v39 = vpop.f32.mrf.mxu1 }
  0xe8   : > { %611 = vst [vmem:[%s1372_s26] sm:$0xff] %v485_v24  ;;  %v496_v26 = vadd.f32 %v1002_v25, %v1369_v20  ;;  %v680_v33 = vmul.f32 %v485_v24, %v485_v24  ;;  %627 = vst [vmem:[%s1372_s26 + $0x80] sm:$0xff] %v1388_v38  ;;  %v1395_v45 = vadd.f32 %v1018_v39, %v1369_v20 }
  0xe9   : > { %v487_v27 = vpop.f32.mrf.mxu0  ;;  %v551_v46 = vpop.f32.mrf.mxu1 }
  0xea   : > { %614 = vst [vmem:[%s1372_s26 + $0x18] sm:$0xff] %v496_v26  ;;  %v488_v29 = vadd.f32 %v1369_v20, %v487_v27  ;;  %v683_v47 = vmul.f32 %v496_v26, %v496_v26  ;;  %630 = vst [vmem:[%s1372_s26 + $0x98] sm:$0xff] %v1395_v45  ;;  %v1402_v52 = vadd.f32 %v1369_v20, %v551_v46 }
  0xeb   : > { %v1005_v31 = vpop.f32.mrf.mxu0  ;;  %v1021_v53 = vpop.f32.mrf.mxu1 }
  0xec   : > { %612 = vst [vmem:[%s1372_s26 + $0x8] sm:$0xff] %v488_v29  ;;  %v643_v34 = vadd.f32 %v488_v29, %v485_v24  ;;  %v681_v35 = vmul.f32 %v488_v29, %v488_v29  ;;  %v509_v36 = vadd.f32 %v1005_v31, %v1369_v20  ;;  %628 = vst [vmem:[%s1372_s26 + $0x88] sm:$0xff] %v1402_v52 }
  0xed   : > { %v500_v37 = vpop.f32.mrf.mxu0  ;;  %v1409_v59 = vadd.f32 %v1021_v53, %v1369_v20  ;;  %v564_v60 = vpop.f32.mrf.mxu1 }
  0xee   : > { %v644_v41 = vadd.f32 %v643_v34, %v493_v22  ;;  %v712_v42 = vadd.f32 %v681_v35, %v680_v33  ;;  %617 = vst [vmem:[%s1372_s26 + $0x30] sm:$0xff] %v509_v36  ;;  %v501_v43 = vadd.f32 %v1369_v20, %v500_v37  ;;  %v1416_v2 = vadd.f32 %v1369_v20, %v564_v60 }
  0xef   : > { %v1006_v44 = vpop.f32.mrf.mxu0  ;;  %633 = vst [vmem:[%s1372_s26 + $0xb0] sm:$0xff] %v1409_v59  ;;  %v1022_v3 = vpop.f32.mrf.mxu1  ;;  %v686_v4 = vmul.f32 %v509_v36, %v509_v36 }
  0xf0   : > { %v713_v48 = vadd.f32 %v712_v42, %v682_v40  ;;  %615 = vst [vmem:[%s1372_s26 + $0x20] sm:$0xff] %v501_v43  ;;  %v645_v49 = vadd.f32 %v644_v41, %v496_v26  ;;  %v512_v50 = vadd.f32 %v1006_v44, %v1369_v20  ;;  %v684_v55 = vmul.f32 %v501_v43, %v501_v43 }
  0xf1   : > { %v503_v51 = vpop.f32.mrf.mxu0  ;;  %631 = vst [vmem:[%s1372_s26 + $0xa0] sm:$0xff] %v1416_v2  ;;  %v1423_v9 = vadd.f32 %v1022_v3, %v1369_v20  ;;  %v567_v10 = vpop.f32.mrf.mxu1 }
  0xf2   : > { %v646_v54 = vadd.f32 %v645_v49, %v501_v43  ;;  %v714_v56 = vadd.f32 %v713_v48, %v683_v47  ;;  %618 = vst [vmem:[%s1372_s26 + $0x38] sm:$0xff] %v512_v50  ;;  %v504_v57 = vadd.f32 %v1369_v20, %v503_v51  ;;  %v687_v11 = vmul.f32 %v512_v50, %v512_v50 }
  0xf3   : > { %v1009_v58 = vpop.f32.mrf.mxu0  ;;  %634 = vst [vmem:[%s1372_s26 + $0xb8] sm:$0xff] %v1423_v9  ;;  %v1430_v16 = vadd.f32 %v1369_v20, %v567_v10  ;;  %v1025_v17 = vpop.f32.mrf.mxu1  ;;  %v696_v10 = vmul.f32 %v1388_v38, %v1388_v38 }
  0xf4   : > { %v715_v61 = vadd.f32 %v714_v56, %v684_v55  ;;  %616 = vst [vmem:[%s1372_s26 + $0x28] sm:$0xff] %v504_v57  ;;  %v647_v62 = vadd.f32 %v646_v54, %v504_v57  ;;  %v685_v63 = vmul.f32 %v504_v57, %v504_v57  ;;  %v525_v0 = vadd.f32 %v1009_v58, %v1369_v20 }
  0xf5   : > { %v516_v1 = vpop.f32.mrf.mxu0  ;;  %632 = vst [vmem:[%s1372_s26 + $0xa8] sm:$0xff] %v1430_v16  ;;  %v1437_v24 = vadd.f32 %v1025_v17, %v1369_v20  ;;  %v580_v25 = vpop.f32.mrf.mxu1 }
  0xf6   : > { %v648_v5 = vadd.f32 %v647_v62, %v509_v36  ;;  %v716_v6 = vadd.f32 %v715_v61, %v685_v63  ;;  %621 = vst [vmem:[%s1372_s26 + $0x50] sm:$0xff] %v525_v0  ;;  %v517_v7 = vadd.f32 %v1369_v20, %v516_v1  ;;  %v1444_v32 = vadd.f32 %v1369_v20, %v580_v25 }
  0xf7   : > { %v1010_v8 = vpop.f32.mrf.mxu0  ;;  %637 = vst [vmem:[%s1372_s26 + $0xd0] sm:$0xff] %v1437_v24  ;;  %v1026_v33 = vpop.f32.mrf.mxu1  ;;  %v690_v34 = vmul.f32 %v525_v0, %v525_v0 }
  0xf8   : > { %v717_v12 = vadd.f32 %v716_v6, %v686_v4  ;;  %619 = vst [vmem:[%s1372_s26 + $0x40] sm:$0xff] %v517_v7  ;;  %v649_v13 = vadd.f32 %v648_v5, %v512_v50  ;;  %v528_v14 = vadd.f32 %v1010_v8, %v1369_v20  ;;  %v688_v19 = vmul.f32 %v517_v7, %v517_v7 }
  0xf9   : > { %v519_v15 = vpop.f32.mrf.mxu0  ;;  %635 = vst [vmem:[%s1372_s26 + $0xc0] sm:$0xff] %v1444_v32  ;;  %v1451_v40 = vadd.f32 %v1026_v33, %v1369_v20  ;;  %v583_v41 = vpop.f32.mrf.mxu1 }
  0xfa   : > { %v650_v18 = vadd.f32 %v649_v13, %v517_v7  ;;  %v718_v21 = vadd.f32 %v717_v12, %v687_v11  ;;  %622 = vst [vmem:[%s1372_s26 + $0x58] sm:$0xff] %v528_v14  ;;  %v520_v22 = vadd.f32 %v1369_v20, %v519_v15  ;;  %v691_v42 = vmul.f32 %v528_v14, %v528_v14 }
  0xfb   : > { %v1013_v23 = vpop.f32.mrf.mxu0  ;;  %638 = vst [vmem:[%s1372_s26 + $0xd8] sm:$0xff] %v1451_v40  ;;  %v1458_v48 = vadd.f32 %v1369_v20, %v583_v41  ;;  %v1029_v49 = vpop.f32.mrf.mxu1 }
  0xfc   : > { %v719_v26 = vadd.f32 %v718_v21, %v688_v19  ;;  %620 = vst [vmem:[%s1372_s26 + $0x48] sm:$0xff] %v520_v22  ;;  %v651_v27 = vadd.f32 %v650_v18, %v520_v22  ;;  %v689_v28 = vmul.f32 %v520_v22, %v520_v22  ;;  %v541_v29 = vadd.f32 %v1013_v23, %v1369_v20 }
  0xfd   : > { %v532_v31 = vpop.f32.mrf.mxu0  ;;  %636 = vst [vmem:[%s1372_s26 + $0xc8] sm:$0xff] %v1458_v48  ;;  %v1465_v55 = vadd.f32 %v1029_v49, %v1369_v20  ;;  %v596_v56 = vpop.f32.mrf.mxu1 }
  0xfe   : > { %v652_v35 = vadd.f32 %v651_v27, %v525_v0  ;;  %v720_v36 = vadd.f32 %v719_v26, %v689_v28  ;;  %625 = vst [vmem:[%s1372_s26 + $0x70] sm:$0xff] %v541_v29  ;;  %v533_v37 = vadd.f32 %v1369_v20, %v532_v31  ;;  %v1469_v61 = vadd.f32 %v1369_v20, %v596_v56 }
  0xff   : > { %v1014_v39 = vpop.f32.mrf.mxu0  ;;  %641 = vst [vmem:[%s1372_s26 + $0xf0] sm:$0xff] %v1465_v55  ;;  %v1030_v62 = vpop.f32.mrf.mxu1  ;;  %v694_v63 = vmul.f32 %v541_v29, %v541_v29 }
 0x100   : > { %v721_v43 = vadd.f32 %v720_v36, %v690_v34  ;;  %623 = vst [vmem:[%s1372_s26 + $0x60] sm:$0xff] %v533_v37  ;;  %v653_v44 = vadd.f32 %v652_v35, %v528_v14  ;;  %v544_v46 = vadd.f32 %v1014_v39, %v1369_v20  ;;  %v692_v51 = vmul.f32 %v533_v37, %v533_v37 }
 0x101   : > { %v535_v47 = vpop.f32.mrf.mxu0  ;;  %639 = vst [vmem:[%s1372_s26 + $0xe0] sm:$0xff] %v1469_v61  ;;  %v1478_v3 = vadd.f32 %v1030_v62, %v1369_v20  ;;  %v599_v4 = vpop.f32.mrf.mxu1 }
 0x102   : > { %v654_v50 = vadd.f32 %v653_v44, %v533_v37  ;;  %v722_v53 = vadd.f32 %v721_v43, %v691_v42  ;;  %626 = vst [vmem:[%s1372_s26 + $0x78] sm:$0xff] %v544_v46  ;;  %v536_v54 = vadd.f32 %v1369_v20, %v535_v47  ;;  %v695_v5 = vmul.f32 %v544_v46, %v544_v46 }
 0x103   : > { %642 = vst [vmem:[%s1372_s26 + $0xf8] sm:$0xff] %v1478_v3  ;;  %v1490_v8 = vadd.f32 %v1369_v20, %v599_v4 }
 0x104   : > { %v723_v57 = vadd.f32 %v722_v53, %v692_v51  ;;  %624 = vst [vmem:[%s1372_s26 + $0x68] sm:$0xff] %v536_v54  ;;  %v655_v58 = vadd.f32 %v654_v50, %v536_v54  ;;  %v693_v60 = vmul.f32 %v536_v54, %v536_v54 }
 0x105   : > { %640 = vst [vmem:[%s1372_s26 + $0xe8] sm:$0xff] %v1490_v8 }
 0x106   : > { %v656_v0 = vadd.f32 %v655_v58, %v541_v29  ;;  %v724_v1 = vadd.f32 %v723_v57, %v693_v60 }
 0x108   : > { %v725_v6 = vadd.f32 %v724_v1, %v694_v63  ;;  %v657_v7 = vadd.f32 %v656_v0, %v544_v46 }
 0x10a   : > { %v658_v11 = vadd.f32 %v657_v7, %v1388_v38  ;;  %v726_v12 = vadd.f32 %v725_v6, %v695_v5 }
 0x10b   : > { %1133 = shalt.err (!%p1130_p5)
}
 0x10c   : > { %s1134_s13 = scalar_lea.hbm %s1483_s7, 4096  ;;  %s1138_s24 = scalar_lea.hbm %s1615_s3, 8192 }
 0x10d   : > { %p1135_p6 = scmp.ne.s32.totalorder %s1483_s7, %s1134_s13  ;;  %p1139_p10 = scmp.lt.s32.totalorder %s1483_s7, %s1615_s3 }
 0x10e   : > { %p1140_p11 = scmp.lt.s32.totalorder %s1138_s24, %s1134_s13 }
 0x10f   : > { %p1136_p7 = pnand %p1135_p6, %p1297_p4 }
 0x110   : > { %p1141_p12 = por %p1140_p11, %p1139_p10 }
 0x111   : > { %p1137_p9 = pneg %p1136_p7 }
 0x113   : > { %p1142_p13 = pnand %p1141_p12, %p1137_p9 }
 0x115   : > { %1145 = shalt.err (!%p1142_p13)
}
 0x116   : > { %s1229_s5 = smov 128   ;;  %s1230_s6 = smov 8   ;;  %v659_v20 = vadd.f32 %v658_v11, %v1402_v52  ;;  %v697_v38 = vmul.f32 %v1402_v52, %v1402_v52  ;;  %v727_v13 = vadd.f32 %v726_v12, %v696_v10  ;;  %v698_v14 = vmul.f32 %v1381_v30, %v1381_v30 }
 0x117   : > { %1039 = dma.vmem_to_hbm [thread:$0]  (%p1297_p4), %s1485_s30, 4096, %s1483_s7, %s754_s8, %s1229_s5, %s1229_s5, %s1230_s6   ;;  %v699_v18 = vmul.f32 %v1395_v45, %v1395_v45  ;;  %v700_v23 = vmul.f32 %v1416_v2, %v1416_v2  ;;  %v701_v27 = vmul.f32 %v1430_v16, %v1430_v16  ;;  %v704_v34 = vmul.f32 %v1444_v32, %v1444_v32 }
 0x118   : > { %v660_v15 = vadd.f32 %v659_v20, %v1381_v30  ;;  %v728_v17 = vadd.f32 %v727_v13, %v697_v38  ;;  %v702_v30 = vmul.f32 %v1409_v59, %v1409_v59  ;;  %v705_v37 = vmul.f32 %v1458_v48, %v1458_v48  ;;  %s927_s30 = sshll.u32 %s1363_s14, 3  ;;  %s970_s7 = sshll.u32 %s1218_s18, 7 }
 0x119   : > { %v708_v44 = vmul.f32 %v1469_v61, %v1469_v61  ;;  %v710_v49 = vmul.f32 %v1465_v55, %v1465_v55  ;;  %vm749_vm2 = vcmask 1040384   ;;  %s242_s8 = scalar_lea.vmem [#allocation4], %s927_s30  ;;  %s1570_s12 = scalar_lea.hbm %s1616_s4, %s970_s7 }
 0x11a   : > { %v729_v19 = vadd.f32 %v728_v17, %v698_v14  ;;  %v661_v21 = vadd.f32 %v660_v15, %v1395_v45  ;;  %v703_v45 = vmul.f32 %v1423_v9, %v1423_v9  ;;  %s790_s9 = sshll.u32 %s242_s8, 4  ;;  %s759_s13 = scalar_lea.sflag [#allocation5], %s1363_s14  ;;  %s791_s9 = int_to_ptr.vmem [resolvable:$true] %s790_s9 }
 0x11b   : > { %s1146_s21 = scalar_lea.vmem %s791_s9, 128  ;;  %s1231_s18 = smov [#allocation4]  }
 0x11c   : > { %v662_v22 = vadd.f32 %v661_v21, %v1416_v2  ;;  %v730_v25 = vadd.f32 %v729_v19, %v699_v18  ;;  %p1147_p0 = scmp.ne.s32.totalorder %s791_s9, %s1146_s21  ;;  %s1150_s22 = sshll.u32 %s1231_s18, 4  ;;  %s1151_s22 = int_to_ptr.vmem [resolvable:$false] %s1150_s22 }
 0x11d   : > { %s1152_s24 = scalar_lea.vmem %s1151_s22, 256  ;;  %p1153_p3 = scmp.lt.s32.totalorder %s791_s9, %s1151_s22 }
 0x11e   : > { %v731_v52 = vadd.f32 %v730_v25, %v700_v23  ;;  %v663_v26 = vadd.f32 %v662_v22, %v1430_v16  ;;  %p1148_p1 = pnand %p1147_p0, %p1297_p4  ;;  %p1154_p5 = scmp.lt.s32.totalorder %s1152_s24, %s1146_s21 }
 0x120   : > { %v664_v28 = vadd.f32 %v663_v26, %v1409_v59  ;;  %v732_v29 = vadd.f32 %v731_v52, %v701_v27  ;;  %v706_v59 = vmul.f32 %v1437_v24, %v1437_v24  ;;  %p1149_p2 = pneg %p1148_p1  ;;  %p1155_p6 = por %p1154_p5, %p1153_p3 }
 0x122   : > { %v733_v31 = vadd.f32 %v732_v29, %v702_v30  ;;  %v665_v33 = vadd.f32 %v664_v28, %v1423_v9  ;;  %v707_v9 = vmul.f32 %v1451_v40, %v1451_v40  ;;  %p1156_p7 = pnand %p1155_p6, %p1149_p2 }
 0x124   : > { %v666_v2 = vadd.f32 %v665_v33, %v1444_v32  ;;  %v734_v35 = vadd.f32 %v733_v31, %v703_v45 }
 0x126   : > { %v735_v36 = vadd.f32 %v734_v35, %v704_v34  ;;  %v667_v16 = vadd.f32 %v666_v2, %v1458_v48 }
 0x128   : > { %v668_v39 = vadd.f32 %v667_v16, %v1437_v24  ;;  %v736_v41 = vadd.f32 %v735_v36, %v705_v37  ;;  %v709_v24 = vmul.f32 %v1490_v8, %v1490_v8 }
 0x12a   : > { %v737_v42 = vadd.f32 %v736_v41, %v706_v59  ;;  %v669_v43 = vadd.f32 %v668_v39, %v1451_v40  ;;  %v711_v40 = vmul.f32 %v1478_v3, %v1478_v3 }
 0x12c   : > { %v670_v32 = vadd.f32 %v669_v43, %v1469_v61  ;;  %v738_v46 = vadd.f32 %v737_v42, %v707_v9 }
 0x12e   : > { %v739_v47 = vadd.f32 %v738_v46, %v708_v44  ;;  %v671_v48 = vadd.f32 %v670_v32, %v1490_v8 }
 0x130   : > { %v672_v50 = vadd.f32 %v671_v48, %v1465_v55  ;;  %v740_v51 = vadd.f32 %v739_v47, %v709_v24 }
 0x132   : > { %v673_v53 = vadd.f32 %v672_v50, %v1478_v3  ;;  %v741_v54 = vadd.f32 %v740_v51, %v710_v49 }
 0x134   : > { %v674_v56 = vrot.slane %v673_v53, 4  ;;  %v742_v57 = vadd.f32 %v741_v54, %v711_v40 }
 0x136   : > { %v675_v58 = vadd.f32 %v674_v56, %v673_v53  ;;  %v743_v60 = vrot.slane %v742_v57, 4 }
 0x138   : > { %v676_v61 = vrot.slane %v675_v58, 2  ;;  %v744_v62 = vadd.f32 %v743_v60, %v742_v57 }
 0x13a   : > { %v677_v63 = vadd.f32 %v676_v61, %v675_v58  ;;  %v745_v0 = vrot.slane %v744_v62, 2 }
 0x13c   : > { %v678_v1 = vrot.slane %v677_v63, 1  ;;  %v746_v55 = vadd.f32 %v745_v0, %v744_v62 }
 0x13e   : > { %v747_v4 = vrot.slane %v746_v55, 1  ;;  %v679_v3 = vadd.f32 %v678_v1, %v677_v63 }
 0x140   : > { %v748_v5 = vadd.f32 %v747_v4, %v746_v55 }
 0x142   : > { %v750_v6 = vsel %vm749_vm2, %v679_v3, %v748_v5 }
 0x143   : > { %v751_v7 = vsel %vm446_vm0, %v750_v6, 0.0 }
 0x144   : > { %752 = vst [vmem:[%s242_s8] sm:$0xff] %v751_v7 }
 0x145   : > { %1159 = shalt.err (!%p1156_p7)
}
 0x146   : > { %s1160_s26 = scalar_lea.hbm %s1570_s12, 128  ;;  %s1164_s5 = scalar_lea.hbm %s1616_s4, 256 }
 0x147   : > { %p1161_p9 = scmp.ne.s32.totalorder %s1570_s12, %s1160_s26  ;;  %p1165_p12 = scmp.lt.s32.totalorder %s1570_s12, %s1616_s4 }
 0x148   : > { %p1166_p13 = scmp.lt.s32.totalorder %s1164_s5, %s1160_s26 }
 0x149   : > { %p1162_p10 = pnand %p1161_p9, %p1297_p4 }
 0x14a   : > { %p1167_p0 = por %p1166_p13, %p1165_p12 }
 0x14b   : > { %p1163_p11 = pneg %p1162_p10 }
 0x14d   : > { %p1168_p1 = pnand %p1167_p0, %p1163_p11 }
 0x14f   : > { %1171 = shalt.err (!%p1168_p1)
}
 0x150   : > { %1040 = dma.vmem_to_hbm [thread:$0]  (%p1297_p4), %s791_s9, 128, %s1570_s12, %s759_s13  }
 0x151 PF: > { %p1050_p2 = scmp.ge.s32.totalorder %s1226_s20, 2  ;;  %s802_s7 = sand.u32 1, %s1206_s15  }
 0x152   : > { %s803_s8 = scalar_lea.sflag [#allocation3], %s802_s7 }
 0x153   : > { %p1044_p3 = pnand %p1050_p2, %p1304_p8 }
 0x155   : > { %p1045_p5 = pneg %p1044_p3 }
 0x157   : > { %1197 = dma.done.wait (%p1045_p5), %s803_s8, 4096  }
 0x158   : > { %1199 = vsyncadd (%p1045_p5), %s803_s8, 4294963200  ;;  %s812_s10 = scalar_lea.sflag [#allocation5], %s802_s7 }
 0x159   : > { %1201 = dma.done.wait (%p1045_p5), %s812_s10, 128  }
 0x15a   : > { %1203 = vsyncadd (%p1045_p5), %s812_s10, 4294967168  ;;  %s21_s20 = sadd.s32 1, %s1226_s20   ;;  %s1619_s15 = smov %s1210_s16 }
 0x15b   : > { %p18_p6 = scmp.ge.s32.totalorder %s21_s20, 4   ;;  %s1620_s16 = smov %s1214_s17 }
 0x15c   : > { %s1621_s17 = smov %s1310_s28  ;;  %s1622_s18 = smov %s1222_s19 }
 0x15d   : > { %s1623_s19 = smov %s1625_s23  ;;  %20 = sbr.rel (!%p18_p6) target bundleno = 6 (0x6), region = 90 }
 0x162   :  { %817 = vsyncpa [#allocation3], 1 }
 0x163   :  { %819 = vsyncpa [#allocation3 + $0x1], 1 }
 0x164   :  { %820 = vsyncpa [#allocation5], 1 }
 0x165   :  { %822 = vsyncpa [#allocation5 + $0x1], 1 }

</bundles_post_ra>
